<compile_context>
chip_gen: v7x
topology: tpu7x:2x2x1
jax: 0.10.0
libtpu: 0.0.40
codegen_flags: <defaults>
</compile_context>

<pallas_src>
import functools

import jax
import jax.numpy as jnp
from jax.experimental import pallas as pl
from jax.experimental.pallas import tpu as pltpu


def _ss_lr_kernel(logits_ref, tcol_ref, out_ref, *, coef_pos, coef_neg, gamma,
                  n_rows, mask_rows):
    tb, lanes = logits_ref.shape          # lanes = k * num_classes (128 when packed)
    k = tcol_ref.shape[1]                 # rows packed per lane-row

    x = logits_ref[...]                   # (tb, lanes) f32 logits
    tcol = tcol_ref[...]                  # (tb, k) i32 packed target columns (-1 => none)

    # One-hot membership without materializing a one-hot matrix:
    # lane j is a target iff j equals one of the k packed target columns of its row.
    j = jax.lax.broadcasted_iota(jnp.int32, (tb, lanes), 1)
    is_target = j == tcol[:, 0:1]
    for s in range(1, k):
        is_target = jnp.logical_or(is_target, j == tcol[:, s:s + 1])

    # softplus(x) = log(1 + e^x) (stable form); log p = x - sp, log(1 - p) = -sp.
    sp = jnp.maximum(x, 0.0) + jnp.log(1.0 + jnp.exp(-jnp.abs(x)))
    log_p = x - sp
    log_1mp = -sp

    if gamma == 0.0:                      # p**0 == 1
        pred_n = log_1mp
    else:
        g = log_p if gamma == 1.0 else gamma * log_p
        pred_n = jnp.exp(g) * log_1mp     # p**gamma * log(1 - p)

    # Per-element contribution to the (already negated / normalized) loss.
    contrib = jnp.where(is_target, coef_pos * log_p, coef_neg * pred_n)

    if mask_rows:  # ragged last tile: zero rows past the end of the packed batch
        row = pl.program_id(0) * tb + jax.lax.broadcasted_iota(jnp.int32, (tb, lanes), 0)
        contrib = jnp.where(row < n_rows, contrib, 0.0)

    out_ref[0, 0] = jnp.sum(contrib)      # one scalar partial per grid step


@functools.partial(jax.jit, static_argnames=("alpha", "gamma"))
def ss_lr_loss(inputs, targets, *, alpha, gamma):
    """inputs: (B, C) f32 logits; targets: (B,) int labels in [0, C). Returns scalar loss."""
    B, C = inputs.shape
    inputs = inputs.astype(jnp.float32)
    targets = targets.astype(jnp.int32)

    # Pack k rows per 128-lane row when C divides 128 (free row-major reshape).
    k = 128 // C if (C < 128 and 128 % C == 0) else 1

    Bp = ((B + k - 1) // k) * k
    if Bp != B:
        # Neutral padding: logit -30 makes both terms ~0; label -1 never matches a lane.
        inputs = jnp.concatenate(
            [inputs, jnp.full((Bp - B, C), -30.0, jnp.float32)], axis=0)
        targets = jnp.concatenate(
            [targets, jnp.full((Bp - B,), -1, jnp.int32)], axis=0)

    R, L = Bp // k, k * C
    xp = inputs.reshape(R, L)
    t2 = targets.reshape(R, k)
    tcol = jnp.arange(k, dtype=jnp.int32)[None, :] * C + t2
    tcol = jnp.where(t2 >= 0, tcol, -1)

    # Batch-tile size: multiple of 8 sublanes, large enough to amortize per-step overhead,
    # tiny vs. any generation's VMEM budget (TB=2048, L=128 -> ~1 MiB per buffered block).
    TB = R if R <= 8 else min(2048, (R // 8) * 8)
    NT = pl.cdiv(R, TB)

    # NOTE: counts are static (each valid label contributes exactly one positive per row),
    # matching torch.scatter_ semantics which requires labels in [0, C).
    kernel = functools.partial(
        _ss_lr_kernel,
        coef_pos=-1.0 / B,                        # folds -1 and 1/count_pos
        coef_neg=-float(alpha) / (B * (C - 1)),   # folds -1, alpha and 1/count_neg
        gamma=float(gamma),
        n_rows=R,
        mask_rows=(NT * TB != R),
    )

    partials = pl.pallas_call(
        kernel,
        out_shape=jax.ShapeDtypeStruct((NT, 1), jnp.float32),
        grid=(NT,),
        in_specs=[
            pl.BlockSpec((TB, L), lambda i: (i, 0)),
            pl.BlockSpec((TB, k), lambda i: (i, 0)),
        ],
        out_specs=pl.BlockSpec((1, 1), lambda i: (i, 0), memory_space=pltpu.SMEM),
        compiler_params=pltpu.CompilerParams(
            dimension_semantics=("parallel",),
            vmem_limit_bytes=32 * 1024 * 1024,
        ),
    )(xp, tcol)

    return jnp.sum(partials)


def _ss_lr_ref(inputs, targets, *, alpha, gamma):
    # Plain-JAX reference mirroring the PyTorch forward (with its eps terms).
    eps = 1e-07
    probs = jax.nn.sigmoid(inputs)
    onehot = jax.nn.one_hot(targets, inputs.shape[1], dtype=jnp.float32)
    count_pos = jnp.sum(onehot)
    count_neg = jnp.sum(1.0 - onehot)
    pred_p = jnp.log(probs + eps)
    pred_n = jnp.power(probs, gamma) * jnp.log(1.0 - probs + eps)
    loss = (jnp.sum(onehot * pred_p) / count_pos
            + alpha * (jnp.sum((1.0 - onehot) * pred_n) / count_neg))
    return -1.0 * loss


if __name__ == "__main__":
    # Deterministic synthetic config ("module __init__" params)
    num_classes = 16
    batch = 8
    alpha = 0.25
    gamma = 2.0

    key = jax.random.PRNGKey(0)
    k_logits, k_tgt = jax.random.split(key)
    inputs = jax.random.normal(k_logits, (batch, num_classes), dtype=jnp.float32)
    targets = jax.random.randint(k_tgt, (batch,), 0, num_classes, dtype=jnp.int32)

    out = ss_lr_loss(inputs, targets, alpha=alpha, gamma=gamma)
    out = jax.block_until_ready(out)

    ref = _ss_lr_ref(inputs, targets, alpha=alpha, gamma=gamma)
    assert jnp.allclose(out, ref, rtol=1e-5, atol=1e-5), (out, ref)

    print("KERNEL_OK")
</pallas_src>

<mosaic_0001>
module attributes {stable_mosaic.version = 11 : i64} {
  func.func @_ss_lr_kernel(%arg0: i32, %arg1: memref<1x128xf32, #tpu.memory_space<vmem>>, %arg2: memref<1x8xi32, #tpu.memory_space<vmem>>, %arg3: memref<1x1xf32, #tpu.memory_space<smem>>) attributes {dimension_semantics = [#tpu.dimension_semantics<parallel>], iteration_bounds = array<i64: 1>, scalar_prefetch = 0 : i64, scratch_operands = 0 : i64, tpu.core_type = #tpu.core_type<tc>, window_params = [{transform_indices = @transform_0, window_bounds = array<i64: 1, 128>}, {transform_indices = @transform_1, window_bounds = array<i64: 1, 8>}, {transform_indices = @transform_2, window_bounds = array<i64: 1, 1>}]} {
    %c0 = arith.constant 0 : index
    %c0_0 = arith.constant 0 : index
    %0 = vector.load %arg1[%c0, %c0_0] : memref<1x128xf32, #tpu.memory_space<vmem>>, vector<1x128xf32>
    %c0_1 = arith.constant 0 : index
    %c0_2 = arith.constant 0 : index
    %1 = vector.load %arg2[%c0_1, %c0_2] : memref<1x8xi32, #tpu.memory_space<vmem>>, vector<1x8xi32>
    %2 = tpu.iota {dimensions = array<i32: 1>} : vector<1x128xi32>
    %3 = vector.extract_strided_slice %1 {offsets = [0, 0], sizes = [1, 1], strides = [1, 1]} : vector<1x8xi32> to vector<1x1xi32>
    %4 = vector.broadcast %3 : vector<1x1xi32> to vector<1x128xi32>
    %5 = arith.cmpi eq, %2, %4 : vector<1x128xi32>
    %6 = vector.extract_strided_slice %1 {offsets = [0, 1], sizes = [1, 1], strides = [1, 1]} : vector<1x8xi32> to vector<1x1xi32>
    %7 = vector.broadcast %6 : vector<1x1xi32> to vector<1x128xi32>
    %8 = arith.cmpi eq, %2, %7 : vector<1x128xi32>
    %9 = arith.ori %5, %8 : vector<1x128xi1>
    %10 = vector.extract_strided_slice %1 {offsets = [0, 2], sizes = [1, 1], strides = [1, 1]} : vector<1x8xi32> to vector<1x1xi32>
    %11 = vector.broadcast %10 : vector<1x1xi32> to vector<1x128xi32>
    %12 = arith.cmpi eq, %2, %11 : vector<1x128xi32>
    %13 = arith.ori %9, %12 : vector<1x128xi1>
    %14 = vector.extract_strided_slice %1 {offsets = [0, 3], sizes = [1, 1], strides = [1, 1]} : vector<1x8xi32> to vector<1x1xi32>
    %15 = vector.broadcast %14 : vector<1x1xi32> to vector<1x128xi32>
    %16 = arith.cmpi eq, %2, %15 : vector<1x128xi32>
    %17 = arith.ori %13, %16 : vector<1x128xi1>
    %18 = vector.extract_strided_slice %1 {offsets = [0, 4], sizes = [1, 1], strides = [1, 1]} : vector<1x8xi32> to vector<1x1xi32>
    %19 = vector.broadcast %18 : vector<1x1xi32> to vector<1x128xi32>
    %20 = arith.cmpi eq, %2, %19 : vector<1x128xi32>
    %21 = arith.ori %17, %20 : vector<1x128xi1>
    %22 = vector.extract_strided_slice %1 {offsets = [0, 5], sizes = [1, 1], strides = [1, 1]} : vector<1x8xi32> to vector<1x1xi32>
    %23 = vector.broadcast %22 : vector<1x1xi32> to vector<1x128xi32>
    %24 = arith.cmpi eq, %2, %23 : vector<1x128xi32>
    %25 = arith.ori %21, %24 : vector<1x128xi1>
    %26 = vector.extract_strided_slice %1 {offsets = [0, 6], sizes = [1, 1], strides = [1, 1]} : vector<1x8xi32> to vector<1x1xi32>
    %27 = vector.broadcast %26 : vector<1x1xi32> to vector<1x128xi32>
    %28 = arith.cmpi eq, %2, %27 : vector<1x128xi32>
    %29 = arith.ori %25, %28 : vector<1x128xi1>
    %30 = vector.extract_strided_slice %1 {offsets = [0, 7], sizes = [1, 1], strides = [1, 1]} : vector<1x8xi32> to vector<1x1xi32>
    %31 = vector.broadcast %30 : vector<1x1xi32> to vector<1x128xi32>
    %32 = arith.cmpi eq, %2, %31 : vector<1x128xi32>
    %33 = arith.ori %29, %32 : vector<1x128xi1>
    %cst = arith.constant 0.000000e+00 : f32
    %34 = vector.broadcast %cst : f32 to vector<1x128xf32>
    %35 = arith.maximumf %0, %34 : vector<1x128xf32>
    %36 = math.absf %0 : vector<1x128xf32>
    %cst_3 = arith.constant 0.000000e+00 : f32
    %37 = vector.broadcast %cst_3 : f32 to vector<1x128xf32>
    %38 = arith.subf %37, %36 : vector<1x128xf32>
    %39 = math.exp %38 : vector<1x128xf32>
    %cst_4 = arith.constant 1.000000e+00 : f32
    %40 = vector.broadcast %cst_4 : f32 to vector<1x128xf32>
    %41 = arith.addf %40, %39 : vector<1x128xf32>
    %42 = math.log %41 : vector<1x128xf32>
    %43 = arith.addf %35, %42 : vector<1x128xf32>
    %44 = arith.subf %0, %43 : vector<1x128xf32>
    %cst_5 = arith.constant 0.000000e+00 : f32
    %45 = vector.broadcast %cst_5 : f32 to vector<1x128xf32>
    %46 = arith.subf %45, %43 : vector<1x128xf32>
    %cst_6 = arith.constant 2.000000e+00 : f32
    %47 = vector.broadcast %cst_6 : f32 to vector<1x128xf32>
    %48 = arith.mulf %47, %44 : vector<1x128xf32>
    %49 = math.exp %48 : vector<1x128xf32>
    %50 = arith.mulf %49, %46 : vector<1x128xf32>
    %cst_7 = arith.constant -1.250000e-01 : f32
    %51 = vector.broadcast %cst_7 : f32 to vector<1x128xf32>
    %52 = arith.mulf %51, %44 : vector<1x128xf32>
    %cst_8 = arith.constant -0.00208333344 : f32
    %53 = vector.broadcast %cst_8 : f32 to vector<1x128xf32>
    %54 = arith.mulf %53, %50 : vector<1x128xf32>
    %55 = arith.select %33, %52, %54 : vector<1x128xi1>, vector<1x128xf32>
    %56 = vector.shape_cast %55 : vector<1x128xf32> to vector<1x1x128xf32>
    %cst_9 = arith.constant dense<0.000000e+00> : vector<1xf32>
    %57 = vector.multi_reduction <add>, %56, %cst_9 [1, 2] : vector<1x1x128xf32> to vector<1xf32>
    %58 = vector.shape_cast %57 : vector<1xf32> to vector<1x1x1xf32>
    %59 = vector.extract %58[0, 0, 0] : f32 from vector<1x1x1xf32>
    %c0_10 = arith.constant 0 : index
    %c0_11 = arith.constant 0 : index
    %60 = memref.load %arg3[%c0_10, %c0_11] : memref<1x1xf32, #tpu.memory_space<smem>>
    memref.store %59, %arg3[%c0_10, %c0_11] : memref<1x1xf32, #tpu.memory_space<smem>>
    return
  }
  func.func @transform_0(%arg0: i32) -> (i32, i32) {
    %c0_i32 = arith.constant 0 : i32
    %c0_i32_0 = arith.constant 0 : i32
    return %arg0, %c0_i32 : i32, i32
  }
  func.func @transform_1(%arg0: i32) -> (i32, i32) {
    %c0_i32 = arith.constant 0 : i32
    %c0_i32_0 = arith.constant 0 : i32
    return %arg0, %c0_i32 : i32, i32
  }
  func.func @transform_2(%arg0: i32) -> (i32, i32) {
    %c0_i32 = arith.constant 0 : i32
    %c0_i32_0 = arith.constant 0 : i32
    return %arg0, %c0_i32 : i32, i32
  }
}

</mosaic_0001>

<bundles_post_ra>
// kernel: ss_lr_loss.1
= control target key start
LH: loop header
LB: loop body
LE: loop exit
PB: predicated region body
PF: predicated region fallthrough
CT: control target
= control target key end

     0   :  { %v169_v1 = vmov 2   ;;  %v170_v2 = vmov 0   ;;  %s211_s0 = inlined_call_operand.vmem [shape: f32[1,128], index: 0, kind: input, shape index: {}]   ;;  %s212_s1 = inlined_call_operand.vmem [shape: s32[1,8], index: 1, kind: input, shape index: {}]   ;;  %s213_s2 = inlined_call_operand.hbm [shape: f32[1,1], index: 2, kind: output, shape index: {}]  }
   0x1   :  { %v13_v0 = vld [vmem:[%s212_s1] sm:$0x1]  ;;  %144 = vset.pattern.permute.xlu1 %v169_v1  ;;  %142 = vset.pattern.permute.xlu0 %v170_v2 }
   0x2   :  { %34 = vperm.xlu1 %144, %v13_v0   ;;  %17 = vperm.xlu0 %142, %v13_v0  }
   0x3   :  { %7 = vsyncpa [#allocation3], 0  ;;  %v171_v3 = vmov 3   ;;  %v172_v4 = vmov 1   ;;  %v173_v5 = vmov 4   ;;  %v174_v6 = vmov 5  }
   0x4   :  { %v175_v7 = vmov 6   ;;  %v176_v8 = vmov 7   ;;  %v12_v9 = vld [vmem:[%s211_s0] sm:$0x1]  ;;  %v14_v20 = vlaneseq  ;;  %vm105_vm14 = vcmask 1040384   ;;  %s157_s14 = scalar_lea.hbm %s213_s2, 16 }
   0x5   :  { %v88_v10 = vand.u32 2147483647, %v12_v9  ;;  %v87_v16 = vmax.f32 %v12_v9, 0.0  ;;  %p158_p0 = scmp.ne.s32.totalorder %s213_s2, %s157_s14  ;;  %p161_p1 = scmp.lt.u32.totalorder %s157_s14, %s213_s2 }
   0x6   :  { %145 = vset.pattern.permute.xlu1 %v171_v3  ;;  %143 = vset.pattern.permute.xlu0 %v172_v4  ;;  %v20_v22 = vshrl.u32 %v14_v20, 7  ;;  %v15_v31 = vand.u32 127, %v14_v20 }
   0x7   :  { %43 = vperm.xlu1 %145, %v13_v0   ;;  %25 = vperm.xlu0 %143, %v13_v0   ;;  %v89_v11 = vsub.f32 0.0, %v88_v10  ;;  %p163_p2 = pnand %p161_p1, %p158_p0 }
   0x8   :  { %v21_v26 = vsub.s32 0, %v20_v22 }
   0x9   :  { %v90_v12 = vmul.f32 1.442695, %v89_v11 }
   0xb   :  { %146 = vset.pattern.permute.xlu1 %v173_v5  ;;  %147 = vset.pattern.permute.xlu0 %v174_v6  ;;  %151 = vpow2.f32 %v90_v12 }
   0xc   :  { %52 = vperm.xlu1 %146, %v13_v0   ;;  %61 = vperm.xlu0 %147, %v13_v0  }
  0x10   :  { %148 = vset.pattern.permute.xlu1 %v175_v7  ;;  %150 = vset.pattern.permute.xlu0 %v176_v8 }
  0x11   :  { %70 = vperm.xlu1 %148, %v13_v0  }
  0x15   :  { %149 = vset.pattern.permute.xlu1 %v176_v8  ;;  %v152_v13 = vpop.eup %151 }
  0x16   :  { %79 = vperm.xlu1 %149, %v13_v0   ;;  %v92_v14 = vadd.f32 1.0, %v152_v13 }
  0x18   :  { %153 = vlog2.f32 %v92_v14 }
  0x22   :  { %v154_v15 = vpop.eup %153 }
  0x23   :  { %v94_v17 = vmul.f32 0.6931472, %v154_v15 }
  0x25   :  { %v95_v18 = vadd.f32 %v94_v17, %v87_v16 }
  0x27   :  { %v96_v19 = vsub.f32 %v12_v9, %v95_v18  ;;  %v97_v37 = vsub.f32 0.0, %v95_v18 }
  0x29   :  { %v98_v21 = vmul.f32 2.0, %v96_v19  ;;  %v102_v45 = vmul.f32 -0.125, %v96_v19 }
  0x2b   :  { %v99_v25 = vmul.f32 1.442695, %v98_v21 }
  0x2d   :  { %155 = vpow2.f32 %v99_v25 }
  0x37   :  { %v156_v38 = vpop.eup %155 }
  0x38   :  { %v101_v42 = vmul.f32 %v156_v38, %v97_v37 }
  0x3a   :  { %v103_v46 = vmul.f32 -0.0020833334, %v101_v42 }
  0x81   :  { %v35_v23 = vpop.permute.xlu1 %34  ;;  %v18_v24 = vpop.permute.xlu0 %17 }
  0x82   :  { %v22_v27 = vrot.slane %v18_v24, %v21_v26  ;;  %v39_v32 = vrot.slane %v35_v23, %v21_v26 }
  0x84   :  { %vm23_vm0 = vcmp.eq.s32.totalorder %v15_v31, %v22_v27  ;;  %vm40_vm3 = vcmp.eq.s32.totalorder %v15_v31, %v39_v32 }
  0x86   :  { %v44_v28 = vpop.permute.xlu1 %43  ;;  %v26_v29 = vpop.permute.xlu0 %25 }
  0x87   :  { %v30_v30 = vrot.slane %v26_v29, %v21_v26  ;;  %v48_v36 = vrot.slane %v44_v28, %v21_v26 }
  0x89   :  { %vm31_vm1 = vcmp.eq.s32.totalorder %v15_v31, %v30_v30  ;;  %vm49_vm6 = vcmp.eq.s32.totalorder %v15_v31, %v48_v36 }
  0x8a   :  { %vm32_vm2 = vmor %vm23_vm0, %vm31_vm1 }
  0x8b   :  { %v53_v33 = vpop.permute.xlu1 %52  ;;  %v62_v35 = vpop.permute.xlu0 %61  ;;  %vm41_vm4 = vmor %vm32_vm2, %vm40_vm3 }
  0x8c   :  { %v57_v34 = vrot.slane %v53_v33, %v21_v26  ;;  %v66_v39 = vrot.slane %v62_v35, %v21_v26  ;;  %vm50_vm7 = vmor %vm41_vm4, %vm49_vm6 }
  0x8e   :  { %vm58_vm5 = vcmp.eq.s32.totalorder %v15_v31, %v57_v34  ;;  %vm67_vm9 = vcmp.eq.s32.totalorder %v15_v31, %v66_v39 }
  0x8f   :  { %vm59_vm8 = vmor %vm50_vm7, %vm58_vm5 }
  0x90   :  { %v71_v40 = vpop.permute.xlu1 %70  ;;  %vm68_vm11 = vmor %vm59_vm8, %vm67_vm9 }
  0x91   :  { %v75_v41 = vrot.slane %v71_v40, %v21_v26 }
  0x93   :  { %vm76_vm10 = vcmp.eq.s32.totalorder %v15_v31, %v75_v41 }
  0x94   :  { %vm77_vm12 = vmor %vm68_vm11, %vm76_vm10 }
  0x95   :  { %v80_v43 = vpop.permute.xlu1 %79 }
  0x96   :  { %v84_v44 = vrot.slane %v80_v43, %v21_v26 }
  0x98   :  { %vm85_vm13 = vcmp.eq.s32.totalorder %v15_v31, %v84_v44 }
  0x99   :  { %vm86_vm15 = vmor %vm77_vm12, %vm85_vm13 }
  0x9a   :  { %v104_v47 = vsel %vm86_vm15, %v102_v45, %v103_v46 }
  0x9b   :  { %v106_v48 = vsel %vm105_vm14, %v104_v47, 0.0 }
  0x9c   :  { %107 = vadd.xlane.f32.xlu0 %v106_v48 }
 0x129   :  { %v108_v49 = vpop.xlane.xlu0 %107 }
 0x12a   :  { %v109_v50 = vrot.slane %v108_v49, 4 }
 0x12c   :  { %v110_v51 = vadd.f32 %v109_v50, %v108_v49 }
 0x12e   :  { %v111_v52 = vrot.slane %v110_v51, 2 }
 0x130   :  { %v112_v53 = vadd.f32 %v111_v52, %v110_v51 }
 0x132   :  { %v113_v54 = vrot.slane %v112_v53, 1 }
 0x134   :  { %v114_v55 = vadd.f32 %v113_v54, %v112_v53 }
 0x136   :  { %131 = vpush %v114_v55 }
 0x167   :  { %s132_s0 = spop %131 }
 0x168   :  { %117 = sst [smem:[#allocation2]] %s132_s0 }
 0x169   :  { %166 = shalt.err (!%p163_p2)
}
 0x16a   :  { %s177_s19 = smov [#allocation2]  }
 0x16b   :  { %125 = dma.smem_to_hbm %s177_s19, 16, %s213_s2, [#allocation3]  }
 0x16c   :  { %167 = dma.done.wait [#allocation3], 16  }
 0x16d   :  { %168 = vsyncadd [#allocation3], 4294967280 }
 0x16e   :  { %129 = sfence }
 0x16f   :  { %130 = vsyncpa [#allocation3], 1 }

</bundles_post_ra>
